<compile_context>
chip_gen: v7x
topology: tpu7x:2x2x1
jax: 0.10.0
libtpu: 0.0.40
codegen_flags: <defaults>
</compile_context>

<pallas_src>
import functools

import jax
import jax.numpy as jnp
from jax.experimental import pallas as pl
from jax.experimental.pallas import tpu as pltpu

# Finite stand-in for -inf so a fully-masked / all -inf lane yields exp(.)=0
# instead of NaN in the per-lane partial reduce.
_NEG_CAP = float(jnp.finfo(jnp.float32).min)

_FAST_PATH_MAX_ELEMS = 1 << 20            # <= 4 MiB of f32 -> single-pass path
_TILE_TARGET_BYTES = 4 * 1024 * 1024      # ~4 MiB DMA per tile (tiled path)
_MAX_TILE_F32_BYTES = 8 * 1024 * 1024     # cap on a tile's f32 working set


# --------------------------------------------------------------------------
# Kernels
# --------------------------------------------------------------------------
def _fused_softmax_kernel(x_ref, o_ref):
    """Single-pass path: the whole (rows, lanes) array is VMEM resident."""
    x = x_ref[...].astype(jnp.float32)
    m = jnp.max(x)                         # one global reduce, done once
    e = jnp.exp(x - m)
    l = jnp.sum(e)
    o_ref[...] = (e * (1.0 / l)).astype(o_ref.dtype)


def _partial_reduce_kernel(x_ref, m_ref, l_ref, *, tile_rows, valid_rows, lanes):
    """Tiled path, stage A: per-tile, per-lane partial max and sum(exp)."""
    x = x_ref[...].astype(jnp.float32)
    if valid_rows is not None:             # ragged last tile -> mask its rows
        row = (jax.lax.broadcasted_iota(jnp.int32, x.shape, 0)
               + pl.program_id(0) * tile_rows)
        x = jnp.where(row < valid_rows, x, -jnp.inf)
    m = jnp.max(x, axis=0, keepdims=True)                  # (1, lanes)
    e = jnp.exp(x - jnp.maximum(m, _NEG_CAP))              # safe if m == -inf
    l = jnp.sum(e, axis=0, keepdims=True)                  # (1, lanes)
    # (8, lanes) output blocks keep the stores fully (8,128)-tile aligned.
    m_ref[...] = jnp.broadcast_to(m, (8, lanes))
    l_ref[...] = jnp.broadcast_to(l, (8, lanes))


def _normalize_kernel(scale_ref, x_ref, o_ref):
    """Tiled path, stage C: o = exp(x - m_global) * (1 / l_global)."""
    x = x_ref[...].astype(jnp.float32)
    m = scale_ref[0]                       # global max        (SMEM scalar)
    inv_l = scale_ref[1]                   # 1 / global sum    (SMEM scalar)
    o_ref[...] = (jnp.exp(x - m) * inv_l).astype(o_ref.dtype)


# --------------------------------------------------------------------------
# Tiled (large input) path: parallel partial reduce -> combine -> normalize
# --------------------------------------------------------------------------
def _tiled_softmax(x2d, tile_target_bytes):
    rows, lanes = x2d.shape
    dtype = x2d.dtype
    itemsize = jnp.dtype(dtype).itemsize

    # Tile sized in bytes of the input dtype (~4 MiB DMAs), capped so the f32
    # working set per tile stays bounded; multiple of 8 rows.
    tile_rows = max(8, (tile_target_bytes // (lanes * itemsize)) // 8 * 8)
    max_f32_rows = max(8, (_MAX_TILE_F32_BYTES // 4 // lanes) // 8 * 8)
    tile_rows = min(tile_rows, max_f32_rows)
    if tile_rows >= rows:
        tile_rows = rows                   # single full-extent tile
    num_tiles = pl.cdiv(rows, tile_rows)
    ragged = (rows % tile_rows) != 0

    reduce_kernel = functools.partial(
        _partial_reduce_kernel,
        tile_rows=tile_rows,
        valid_rows=rows if ragged else None,
        lanes=lanes,
    )

    part_shape = jax.ShapeDtypeStruct((num_tiles * 8, lanes), jnp.float32)

    # Stage A: per-tile, per-lane partials.  Fully "parallel" -> on v7x the
    # tile sweep can be sharded across both TensorCores.
    m_part, l_part = pl.pallas_call(
        reduce_kernel,
        grid=(num_tiles,),
        in_specs=[pl.BlockSpec((tile_rows, lanes), lambda i: (i, 0))],
        out_specs=(pl.BlockSpec((8, lanes), lambda i: (i, 0)),
                   pl.BlockSpec((8, lanes), lambda i: (i, 0))),
        out_shape=(part_shape, part_shape),
        compiler_params=pltpu.CompilerParams(
            dimension_semantics=("parallel",),
            vmem_limit_bytes=48 * 1024 * 1024),
    )(x2d)

    # Stage B: tiny global combine (num_tiles x lanes values) in plain JAX.
    m_rows = m_part.reshape(num_tiles, 8, lanes)[:, 0, :]
    l_rows = l_part.reshape(num_tiles, 8, lanes)[:, 0, :]
    m_global = jnp.max(m_rows)
    l_global = jnp.sum(l_rows * jnp.exp(m_rows - m_global))
    scale = jnp.stack([m_global, 1.0 / l_global]).astype(jnp.float32)

    # Stage C: normalize sweep, also fully "parallel".
    out2d = pl.pallas_call(
        _normalize_kernel,
        grid=(num_tiles,),
        in_specs=[pl.BlockSpec(memory_space=pltpu.MemorySpace.SMEM),
                  pl.BlockSpec((tile_rows, lanes), lambda i: (i, 0))],
        out_specs=pl.BlockSpec((tile_rows, lanes), lambda i: (i, 0)),
        out_shape=jax.ShapeDtypeStruct((rows, lanes), dtype),
        compiler_params=pltpu.CompilerParams(
            dimension_semantics=("parallel",),
            vmem_limit_bytes=48 * 1024 * 1024),
    )(scale, x2d)
    return out2d


# --------------------------------------------------------------------------
# Public wrapper
# --------------------------------------------------------------------------
def stable_softmax(x, *, max_fused_elems=_FAST_PATH_MAX_ELEMS,
                   tile_target_bytes=_TILE_TARGET_BYTES):
    """exp(x - max(x)) / sum(exp(x - max(x))) over all elements (global)."""
    orig_shape = x.shape
    if not jnp.issubdtype(x.dtype, jnp.floating):
        x = x.astype(jnp.float32)          # torch.exp promotes integer inputs
    dtype = x.dtype
    n = x.size
    if n == 0:
        return x

    # Lane-dense flattened layout; prefer a lane count that divides n exactly
    # so no host-side pad / output slice (and their HBM copies) is needed.
    flat = x.reshape(-1)
    lanes = None
    for cand in (512, 256, 128):
        if n % cand == 0:
            lanes = cand
            break
    padded_n = n
    if lanes is None:
        # TODO(synk): mask the lane tail in-kernel instead of padding, to also
        # avoid this copy for sizes that are not a multiple of 128.
        lanes = 128
        padded_n = ((n + lanes - 1) // lanes) * lanes
        flat = jnp.concatenate(
            [flat, jnp.full((padded_n - n,), -jnp.inf, dtype)])
    rows = padded_n // lanes
    x2d = flat.reshape(rows, lanes)

    if rows * lanes <= max_fused_elems:
        # Fast path: whole array resident in VMEM, 1 read + 1 write of x.
        out2d = pl.pallas_call(
            _fused_softmax_kernel,
            out_shape=jax.ShapeDtypeStruct((rows, lanes), dtype),
            compiler_params=pltpu.CompilerParams(
                vmem_limit_bytes=32 * 1024 * 1024),
        )(x2d)
    else:
        out2d = _tiled_softmax(x2d, tile_target_bytes)

    out = out2d.reshape(-1)
    if padded_n != n:
        out = out[:n]
    return out.reshape(orig_shape)


# --------------------------------------------------------------------------
if __name__ == "__main__":
    key = jax.random.PRNGKey(0)
    k1, k2 = jax.random.split(key)

    # NCHW-style input, consistent with the PyTorch module's usage.
    x = jax.random.normal(k1, (2, 4, 16, 16), dtype=jnp.float32)
    out = jax.block_until_ready(stable_softmax(x))

    c = jnp.max(x)
    e = jnp.exp(x - c)
    ref = e / jnp.sum(e)
    assert out.shape == x.shape and out.dtype == x.dtype
    assert jnp.allclose(out, ref, rtol=5e-5, atol=1e-8)
    assert jnp.allclose(jnp.sum(out), 1.0, rtol=1e-5, atol=1e-6)

    # Also exercise the tiled (multi-TensorCore) path, including a ragged
    # final tile, by forcing small tiles on a modest input.
    x2 = jax.random.normal(k2, (1000, 512), dtype=jnp.float32)
    out2 = jax.block_until_ready(
        stable_softmax(x2, max_fused_elems=0,
                       tile_target_bytes=256 * 512 * 4))
    c2 = jnp.max(x2)
    e2 = jnp.exp(x2 - c2)
    ref2 = e2 / jnp.sum(e2)
    assert out2.shape == x2.shape and out2.dtype == x2.dtype
    assert jnp.allclose(out2, ref2, rtol=5e-5, atol=1e-8)

    print("KERNEL_OK")
</pallas_src>

<mosaic_0001>
module attributes {stable_mosaic.version = 11 : i64} {
  func.func @_fused_softmax_kernel(%arg0: memref<4x512xf32, #tpu.memory_space<vmem>>, %arg1: memref<4x512xf32, #tpu.memory_space<vmem>>) attributes {dimension_semantics = [], scalar_prefetch = 0 : i64, scratch_operands = 0 : i64, tpu.core_type = #tpu.core_type<tc>} {
    %c0 = arith.constant 0 : index
    %c0_0 = arith.constant 0 : index
    %0 = vector.load %arg0[%c0, %c0_0] : memref<4x512xf32, #tpu.memory_space<vmem>>, vector<4x512xf32>
    %1 = vector.shape_cast %0 : vector<4x512xf32> to vector<1x4x512xf32>
    %cst = arith.constant dense<0xFF800000> : vector<1xf32>
    %2 = vector.multi_reduction <maximumf>, %1, %cst [1, 2] : vector<1x4x512xf32> to vector<1xf32>
    %3 = vector.shape_cast %2 : vector<1xf32> to vector<1x1x1xf32>
    %4 = vector.extract %3[0, 0, 0] : f32 from vector<1x1x1xf32>
    %5 = vector.broadcast %4 : f32 to vector<4x512xf32>
    %6 = arith.subf %0, %5 : vector<4x512xf32>
    %7 = math.exp %6 : vector<4x512xf32>
    %8 = vector.shape_cast %7 : vector<4x512xf32> to vector<1x4x512xf32>
    %cst_1 = arith.constant dense<0.000000e+00> : vector<1xf32>
    %9 = vector.multi_reduction <add>, %8, %cst_1 [1, 2] : vector<1x4x512xf32> to vector<1xf32>
    %10 = vector.shape_cast %9 : vector<1xf32> to vector<1x1x1xf32>
    %11 = vector.extract %10[0, 0, 0] : f32 from vector<1x1x1xf32>
    %cst_2 = arith.constant 1.000000e+00 : f32
    %12 = arith.divf %cst_2, %11 : f32
    %13 = vector.broadcast %12 : f32 to vector<4x512xf32>
    %14 = arith.mulf %7, %13 : vector<4x512xf32>
    %c0_3 = arith.constant 0 : index
    %c0_4 = arith.constant 0 : index
    %15 = vector.load %arg1[%c0_3, %c0_4] : memref<4x512xf32, #tpu.memory_space<vmem>>, vector<4x512xf32>
    tpu.vector_store %arg1[%c0_3, %c0_4], %14 {strides = array<i32>} : memref<4x512xf32, #tpu.memory_space<vmem>>, vector<4x512xf32>,
    return
  }
}

</mosaic_0001>

<bundles_post_ra>
// kernel: tpu_custom_call.1
= control target key start
LH: loop header
LB: loop body
LE: loop exit
PB: predicated region body
PF: predicated region fallthrough
CT: control target
= control target key end

     0   :  { %6 = vsyncpa [#allocation3], 0  ;;  %s206_s0 = inlined_call_operand.hbm [shape: f32[4,512], index: 0, kind: input, shape index: {}]   ;;  %s207_s1 = inlined_call_operand.hbm [shape: f32[4,512], index: 1, kind: output, shape index: {}]  }
   0x1   :  { %7 = vsyncpa [#allocation4], 0  ;;  %s162_s6 = smov [#allocation2]   ;;  %s114_s10 = scalar_lea.hbm %s206_s0, 256 }
   0x2   :  { %s14_s7 = sshll.u32 %s162_s6, 4  ;;  %p115_p0 = scmp.ne.s32.totalorder %s206_s0, %s114_s10  ;;  %s15_s7 = int_to_ptr.vmem [resolvable:$true] %s14_s7 }
   0x3   :  { %p118_p1 = scmp.lt.u32.totalorder %s114_s10, %s206_s0 }
   0x5   :  { %p120_p2 = pnand %p118_p1, %p115_p0 }
   0x7   :  { %123 = shalt.err (!%p120_p2)
}
   0x8   :  { %s124_s15 = scalar_lea.vmem %s15_s7, 256  ;;  %p129_p4 = scmp.lt.s32.totalorder %s15_s7, %s15_s7 }
   0x9   :  { %p125_p3 = scmp.ne.s32.totalorder %s15_s7, %s124_s15  ;;  %p130_p5 = scmp.lt.s32.totalorder %s124_s15, %s124_s15 }
   0xb   :  { %p131_p6 = por %p130_p5, %p129_p4 }
   0xd   :  { %p132_p7 = pnand %p131_p6, %p125_p3 }
   0xf   :  { %135 = shalt.err (!%p132_p7)
}
  0x10   :  { %17 = dma.hbm_to_vmem [thread:$0]  %s206_s0, 256, %s15_s7, [#allocation3]  }
  0x11   :  { %158 = dma.done.wait [#allocation3], 256  }
  0x12   :  { %159 = vsyncadd [#allocation3], 4294967040  ;;  %vm29_vm0 = vcmask 1043456   ;;  %v21_v0 = vld [vmem:[#allocation2] sm:$0xff]  ;;  %v22_v1 = vld [vmem:[#allocation2 + $0x8] sm:$0xff]  ;;  %s163_s19 = smov [#allocation5]  }
  0x13   :  { %v25_v2 = vcombine.high %v21_v0, %v21_v0  ;;  %v26_v3 = vcombine.high %v22_v1, %v22_v1  ;;  %v30_v4 = vsel %vm29_vm0, %v21_v0, -inf  ;;  %v32_v5 = vsel %vm29_vm0, %v22_v1, -inf  ;;  %s89_s20 = sshll.u32 %s163_s19, 4  ;;  %s90_s20 = int_to_ptr.vmem [resolvable:$true] %s89_s20 }
  0x14   :  { %s136_s22 = scalar_lea.vmem %s90_s20, 256  ;;  %p141_p9 = scmp.lt.s32.totalorder %s90_s20, %s90_s20 }
  0x15   :  { %v31_v6 = vsel %vm29_vm0, %v25_v2, -inf  ;;  %v33_v7 = vsel %vm29_vm0, %v26_v3, -inf  ;;  %p137_p8 = scmp.ne.s32.totalorder %s90_s20, %s136_s22  ;;  %p142_p10 = scmp.lt.s32.totalorder %s136_s22, %s136_s22 }
  0x16   :  { %v34_v8 = vmax.f32 %v30_v4, %v31_v6  ;;  %v35_v9 = vmax.f32 %v32_v5, %v33_v7 }
  0x17   :  { %p143_p11 = por %p142_p10, %p141_p9 }
  0x18   :  { %v36_v10 = vmax.f32 %v34_v8, %v35_v9 }
  0x19   :  { %p144_p12 = pnand %p143_p11, %p137_p8 }
  0x1a   :  { %37 = vmax.xlane.f32.xlu0 %v36_v10 }
  0xa7   :  { %v38_v11 = vpop.xlane.xlu0 %37 }
  0xa8   :  { %v39_v12 = vrot.slane %v38_v11, 4 }
  0xaa   :  { %v40_v13 = vmax.f32 %v38_v11, %v39_v12 }
  0xac   :  { %v41_v14 = vrot.slane %v40_v13, 2 }
  0xae   :  { %v42_v15 = vmax.f32 %v40_v13, %v41_v14 }
  0xb0   :  { %v43_v16 = vrot.slane %v42_v15, 1 }
  0xb2   :  { %v44_v17 = vmax.f32 %v42_v15, %v43_v16 }
  0xb4   :  { %98 = vpush %v44_v17 }
  0xe5   :  { %s99_s0 = spop %98 }
  0xe6   :  { %v46_v18 = vstv %s99_s0 }
  0xe7   :  { %v47_v19 = vsub.f32 %v21_v0, %v46_v18  ;;  %v48_v20 = vsub.f32 %v22_v1, %v46_v18 }
  0xe9   :  { %v49_v21 = vmul.f32 1.442695, %v47_v19  ;;  %v51_v22 = vmul.f32 1.442695, %v48_v20 }
  0xeb   :  { %108 = vpow2.f32 %v49_v21 }
  0xec   :  { %110 = vpow2.f32 %v51_v22 }
  0xf5   :  { %v109_v23 = vpop.eup %108 }
  0xf6   :  { %v111_v24 = vpop.eup %110  ;;  %v55_v25 = vcombine.high %v109_v23, %v109_v23  ;;  %v59_v27 = vsel %vm29_vm0, %v109_v23, 0.0 }
  0xf7   :  { %v56_v26 = vcombine.high %v111_v24, %v111_v24  ;;  %v62_v30 = vsel %vm29_vm0, %v111_v24, 0.0 }
  0xf8   :  { %v60_v28 = vsel %vm29_vm0, %v55_v25, 0.0 }
  0xf9   :  { %v61_v29 = vadd.f32 %v60_v28, %v59_v27  ;;  %v64_v32 = vsel %vm29_vm0, %v56_v26, 0.0 }
  0xfb   :  { %v63_v31 = vadd.f32 %v62_v30, %v61_v29 }
  0xfd   :  { %v65_v33 = vadd.f32 %v64_v32, %v63_v31 }
  0xff   :  { %66 = vadd.xlane.f32.xlu0 %v65_v33 }
 0x18c   :  { %v67_v34 = vpop.xlane.xlu0 %66 }
 0x18d   :  { %v68_v35 = vrot.slane %v67_v34, 4 }
 0x18f   :  { %v69_v36 = vadd.f32 %v68_v35, %v67_v34 }
 0x191   :  { %v70_v37 = vrot.slane %v69_v36, 2 }
 0x193   :  { %v71_v38 = vadd.f32 %v70_v37, %v69_v36 }
 0x195   :  { %v72_v39 = vrot.slane %v71_v38, 1 }
 0x197   :  { %v73_v40 = vadd.f32 %v72_v39, %v71_v38 }
 0x199   :  { %100 = vpush %v73_v40 }
 0x1ca   :  { %s101_s18 = spop %100 }
 0x1cb   :  { %v75_v41 = vstv %s101_s18 }
 0x1cc   :  { %112 = vrcp.f32 %v75_v41 }
 0x1d6   :  { %v113_v42 = vpop.eup %112 }
 0x1d7   :  { %102 = vpush %v113_v42 }
 0x208   :  { %s103_s21 = spop %102 }
 0x209   :  { %v78_v43 = vstv %s103_s21 }
 0x20a   :  { %v79_v44 = vmul.f32 %v109_v23, %v78_v43  ;;  %v80_v45 = vmul.f32 %v111_v24, %v78_v43 }
 0x20c   :  { %81 = vst [vmem:[#allocation5] sm:$0xff] %v79_v44  ;;  %82 = vst [vmem:[#allocation5 + $0x8] sm:$0xff] %v80_v45 }
 0x20d   :  { %147 = shalt.err (!%p144_p12)
}
 0x20e   :  { %s148_s25 = scalar_lea.hbm %s207_s1, 256 }
 0x20f   :  { %p149_p13 = scmp.ne.s32.totalorder %s207_s1, %s148_s25  ;;  %p152_p0 = scmp.lt.u32.totalorder %s148_s25, %s207_s1 }
 0x211   :  { %p154_p1 = pnand %p152_p0, %p149_p13 }
 0x213   :  { %157 = shalt.err (!%p154_p1)
}
 0x214   :  { %92 = dma.vmem_to_hbm [thread:$0]  %s90_s20, 256, %s207_s1, [#allocation4]  }
 0x215   :  { %160 = dma.done.wait [#allocation4], 256  }
 0x216   :  { %161 = vsyncadd [#allocation4], 4294967040 }
 0x217   :  { %96 = vsyncpa [#allocation3], 1 }
 0x218   :  { %97 = vsyncpa [#allocation4], 1 }

</bundles_post_ra>
